<compile_context>
chip_gen: v6e
topology: v6e:2x2x1
jax: 0.10.0
libtpu: 0.0.40
codegen_flags: <defaults>
</compile_context>

<pallas_src>
import functools

import jax
import jax.numpy as jnp
from jax.experimental import pallas as pl
from jax.experimental.pallas import tpu as pltpu


def _round_up(n, m):
    return ((n + m - 1) // m) * m


def _sublayer_connection_kernel(*refs, eps: float, has_dropout: bool, mxu_dtype):
    if has_dropout:
        x_ref, m_ref, w_ref, wb_ref, a2_ref, b2_ref, o_ref = refs
    else:
        x_ref, w_ref, wb_ref, a2_ref, b2_ref, o_ref = refs
        m_ref = None

    x = x_ref[...].astype(jnp.float32)                       # (tm, F)
    feat = x.shape[-1]

    # LayerNorm, matching the torch module: unbiased std, eps added to std
    # (NOT inside the sqrt).  Done in f32; divide replaced by reciprocal*mul.
    mean = jnp.mean(x, axis=-1, keepdims=True)
    xc = x - mean
    var = jnp.sum(xc * xc, axis=-1, keepdims=True) * (1.0 / (feat - 1))
    inv = 1.0 / (jnp.sqrt(var) + eps)                        # one recip per row
    y = a2_ref[...].astype(jnp.float32) * (xc * inv) + b2_ref[...].astype(jnp.float32)

    # sublayer: Linear(F, F).  Operands in mxu_dtype (bf16 by default) so the
    # MXU runs a single native pass; accumulate in f32.
    z = jnp.dot(y.astype(mxu_dtype), w_ref[...],
                preferred_element_type=jnp.float32) + wb_ref[...].astype(jnp.float32)

    # inverted dropout: mask already holds keep/(1-p) (0 where dropped).
    if has_dropout:
        z = z * m_ref[...].astype(jnp.float32)

    # residual
    o_ref[...] = (x + z).astype(o_ref.dtype)


def sublayer_connection(x, w, wb, a2, b2, *, p_drop=0.1, eps=1e-6,
                        dropout_key=None, tm=256, mxu_dtype=jnp.bfloat16):
    """x: (B, S, F); w: (F, F); wb/a2/b2: (1, F).

    tm: row tile (rounded to a multiple of 8, clamped to the row count).
    mxu_dtype: dtype of the matmul operands (bf16 default for MXU throughput).
    """
    B, S, F = x.shape
    R = B * S
    xf = x.reshape(R, F)

    # Row tile: biggest multiple-of-8 tile <= tm that covers the (padded) rows.
    tm = max(8, min(_round_up(tm, 8), _round_up(R, 8)))
    R_pad = _round_up(R, tm)
    if R_pad != R:
        xf = jnp.pad(xf, ((0, R_pad - R), (0, 0)))

    has_dropout = float(p_drop) > 0.0

    inputs = [xf]
    in_specs = [pl.BlockSpec((tm, F), lambda i: (i, 0))]      # x rows

    if has_dropout:
        if dropout_key is None:
            dropout_key = jax.random.PRNGKey(0)
        if p_drop >= 1.0:
            mask = jnp.zeros((R, F), jnp.float32)             # drop everything
        else:
            keep = jax.random.bernoulli(dropout_key, 1.0 - p_drop, (R, F))
            mask = keep.astype(jnp.float32) * (1.0 / (1.0 - p_drop))
        if R_pad != R:
            mask = jnp.pad(mask, ((0, R_pad - R), (0, 0)))
        inputs.append(mask)
        in_specs.append(pl.BlockSpec((tm, F), lambda i: (i, 0)))

    # Parameters: cast the (F, F) weight to the MXU dtype (halves its VMEM
    # footprint in bf16); the (1, F) vectors stay as-is (full-extent blocks).
    inputs += [w.astype(mxu_dtype), wb, a2, b2]
    in_specs += [
        pl.BlockSpec((F, F), lambda i: (0, 0)),               # sublayer weight
        pl.BlockSpec((1, F), lambda i: (0, 0)),               # sublayer bias
        pl.BlockSpec((1, F), lambda i: (0, 0)),               # layernorm a_2
        pl.BlockSpec((1, F), lambda i: (0, 0)),               # layernorm b_2
    ]

    kernel = functools.partial(_sublayer_connection_kernel, eps=float(eps),
                               has_dropout=has_dropout, mxu_dtype=mxu_dtype)

    out = pl.pallas_call(
        kernel,
        out_shape=jax.ShapeDtypeStruct((R_pad, F), x.dtype),
        grid_spec=pltpu.PrefetchScalarGridSpec(
            num_scalar_prefetch=0,
            grid=(R_pad // tm,),
            in_specs=in_specs,
            out_specs=pl.BlockSpec((tm, F), lambda i: (i, 0)),
        ),
        compiler_params=pltpu.CompilerParams(
            dimension_semantics=("parallel",),     # shards rows across TCs (v7x)
            vmem_limit_bytes=64 << 20,             # big row tiles + resident W
        ),
    )(*inputs)
    return out[:R].reshape(B, S, F)


def _reference(x, w, wb, a2, b2, eps=1e-6):
    # pure-JAX reference of the p_drop == 0 forward (dropout -> identity)
    mean = x.mean(-1, keepdims=True)
    xc = x - mean
    std = jnp.sqrt((xc ** 2).sum(-1, keepdims=True) / (x.shape[-1] - 1))
    y = a2 * xc / (std + eps) + b2
    return x + (y @ w + wb)


if __name__ == "__main__":
    B, S, F = 2, 8, 32
    key = jax.random.PRNGKey(0)
    kx, kw, kb, kd = jax.random.split(key, 4)

    x = jax.random.normal(kx, (B, S, F), dtype=jnp.float32)

    # deterministic parameter init
    a2 = jnp.ones((1, F), jnp.float32)                        # LayerNorm.a_2
    b2 = jnp.zeros((1, F), jnp.float32)                       # LayerNorm.b_2
    w = jax.random.normal(kw, (F, F), jnp.float32) / jnp.sqrt(F)   # sublayer W
    wb = 0.01 * jax.random.normal(kb, (1, F), jnp.float32)         # sublayer b

    ref = _reference(x, w, wb, a2, b2)

    # eval-mode (dropout off), exact f32 matmul: tight correctness check
    out_eval = sublayer_connection(x, w, wb, a2, b2, p_drop=0.0,
                                   mxu_dtype=jnp.float32)
    assert jnp.allclose(out_eval, ref, atol=1e-5, rtol=1e-5), "f32 mismatch vs reference"

    # eval-mode with bf16 MXU operands (default fast path): loose check
    out_eval_bf16 = sublayer_connection(x, w, wb, a2, b2, p_drop=0.0)
    assert jnp.allclose(out_eval_bf16, ref, atol=1e-1, rtol=1e-1), "bf16 mismatch vs reference"

    # training-mode forward with inverted dropout (p = 0.1)
    out_train = sublayer_connection(x, w, wb, a2, b2, p_drop=0.1, dropout_key=kd)

    jax.block_until_ready((out_eval, out_eval_bf16, out_train))
    print("KERNEL_OK")
</pallas_src>

<mosaic_0001>
module attributes {stable_mosaic.version = 11 : i64} {
  func.func @_sublayer_connection_kernel(%arg0: i32, %arg1: memref<16x32xf32, #tpu.memory_space<vmem>>, %arg2: memref<32x32xf32, #tpu.memory_space<vmem>>, %arg3: memref<1x32xf32, #tpu.memory_space<vmem>>, %arg4: memref<1x32xf32, #tpu.memory_space<vmem>>, %arg5: memref<1x32xf32, #tpu.memory_space<vmem>>, %arg6: memref<16x32xf32, #tpu.memory_space<vmem>>) attributes {dimension_semantics = [#tpu.dimension_semantics<parallel>], iteration_bounds = array<i64: 1>, scalar_prefetch = 0 : i64, scratch_operands = 0 : i64, tpu.core_type = #tpu.core_type<tc>, window_params = [{transform_indices = @transform_0, window_bounds = array<i64: 16, 32>}, {pipeline_mode = #tpu.pipeline_mode<synchronous>, transform_indices = @transform_1, window_bounds = array<i64: 32, 32>}, {pipeline_mode = #tpu.pipeline_mode<synchronous>, transform_indices = @transform_2, window_bounds = array<i64: 1, 32>}, {pipeline_mode = #tpu.pipeline_mode<synchronous>, transform_indices = @transform_3, window_bounds = array<i64: 1, 32>}, {pipeline_mode = #tpu.pipeline_mode<synchronous>, transform_indices = @transform_4, window_bounds = array<i64: 1, 32>}, {transform_indices = @transform_5, window_bounds = array<i64: 16, 32>}]} {
    %c0 = arith.constant 0 : index
    %c0_0 = arith.constant 0 : index
    %0 = vector.load %arg1[%c0, %c0_0] : memref<16x32xf32, #tpu.memory_space<vmem>>, vector<16x32xf32>
    %cst = arith.constant dense<0.000000e+00> : vector<16xf32>
    %1 = vector.multi_reduction <add>, %0, %cst [1] : vector<16x32xf32> to vector<16xf32>
    %2 = vector.shape_cast %1 : vector<16xf32> to vector<16x1xf32>
    %cst_1 = arith.constant 3.200000e+01 : f32
    %3 = vector.broadcast %cst_1 : f32 to vector<16x1xf32>
    %4 = arith.divf %2, %3 : vector<16x1xf32>
    %5 = vector.broadcast %4 : vector<16x1xf32> to vector<16x32xf32>
    %6 = arith.subf %0, %5 : vector<16x32xf32>
    %7 = arith.mulf %6, %6 : vector<16x32xf32>
    %cst_2 = arith.constant dense<0.000000e+00> : vector<16xf32>
    %8 = vector.multi_reduction <add>, %7, %cst_2 [1] : vector<16x32xf32> to vector<16xf32>
    %9 = vector.shape_cast %8 : vector<16xf32> to vector<16x1xf32>
    %cst_3 = arith.constant 0.0322580636 : f32
    %10 = vector.broadcast %cst_3 : f32 to vector<16x1xf32>
    %11 = arith.mulf %9, %10 : vector<16x1xf32>
    %12 = math.sqrt %11 : vector<16x1xf32>
    %cst_4 = arith.constant 9.99999997E-7 : f32
    %13 = vector.broadcast %cst_4 : f32 to vector<16x1xf32>
    %14 = arith.addf %12, %13 : vector<16x1xf32>
    %cst_5 = arith.constant 1.000000e+00 : f32
    %15 = vector.broadcast %cst_5 : f32 to vector<16x1xf32>
    %16 = arith.divf %15, %14 : vector<16x1xf32>
    %c0_6 = arith.constant 0 : index
    %c0_7 = arith.constant 0 : index
    %17 = vector.load %arg4[%c0_6, %c0_7] : memref<1x32xf32, #tpu.memory_space<vmem>>, vector<1x32xf32>
    %18 = vector.broadcast %16 : vector<16x1xf32> to vector<16x32xf32>
    %19 = arith.mulf %6, %18 : vector<16x32xf32>
    %20 = vector.broadcast %17 : vector<1x32xf32> to vector<16x32xf32>
    %21 = arith.mulf %20, %19 : vector<16x32xf32>
    %c0_8 = arith.constant 0 : index
    %c0_9 = arith.constant 0 : index
    %22 = vector.load %arg5[%c0_8, %c0_9] : memref<1x32xf32, #tpu.memory_space<vmem>>, vector<1x32xf32>
    %23 = vector.broadcast %22 : vector<1x32xf32> to vector<16x32xf32>
    %24 = arith.addf %21, %23 : vector<16x32xf32>
    %c0_10 = arith.constant 0 : index
    %c0_11 = arith.constant 0 : index
    %25 = vector.load %arg2[%c0_10, %c0_11] : memref<32x32xf32, #tpu.memory_space<vmem>>, vector<32x32xf32>
    %cst_12 = arith.constant dense<0.000000e+00> : vector<16x32xf32>
    %26 = tpu.matmul %24, %25, %cst_12 {dimension_numbers = #tpu.dot_dimension_numbers<[1], [0], [0], [1], [0, 0, 1, 1], [], []>} : vector<16x32xf32>, vector<32x32xf32>, vector<16x32xf32> -> vector<16x32xf32>
    %c0_13 = arith.constant 0 : index
    %c0_14 = arith.constant 0 : index
    %27 = vector.load %arg3[%c0_13, %c0_14] : memref<1x32xf32, #tpu.memory_space<vmem>>, vector<1x32xf32>
    %28 = vector.broadcast %27 : vector<1x32xf32> to vector<16x32xf32>
    %29 = arith.addf %26, %28 : vector<16x32xf32>
    %30 = arith.addf %0, %29 : vector<16x32xf32>
    %c0_15 = arith.constant 0 : index
    %c0_16 = arith.constant 0 : index
    %31 = vector.load %arg6[%c0_15, %c0_16] : memref<16x32xf32, #tpu.memory_space<vmem>>, vector<16x32xf32>
    tpu.vector_store %arg6[%c0_15, %c0_16], %30 {strides = array<i32>} : memref<16x32xf32, #tpu.memory_space<vmem>>, vector<16x32xf32>,
    return
  }
  func.func @transform_0(%arg0: i32) -> (i32, i32) {
    %c0_i32 = arith.constant 0 : i32
    %c0_i32_0 = arith.constant 0 : i32
    return %arg0, %c0_i32 : i32, i32
  }
  func.func @transform_1(%arg0: i32) -> (i32, i32) {
    %c0_i32 = arith.constant 0 : i32
    %c0_i32_0 = arith.constant 0 : i32
    %c0_i32_1 = arith.constant 0 : i32
    return %c0_i32, %c0_i32_0 : i32, i32
  }
  func.func @transform_2(%arg0: i32) -> (i32, i32) {
    %c0_i32 = arith.constant 0 : i32
    %c0_i32_0 = arith.constant 0 : i32
    %c0_i32_1 = arith.constant 0 : i32
    return %c0_i32, %c0_i32_0 : i32, i32
  }
  func.func @transform_3(%arg0: i32) -> (i32, i32) {
    %c0_i32 = arith.constant 0 : i32
    %c0_i32_0 = arith.constant 0 : i32
    %c0_i32_1 = arith.constant 0 : i32
    return %c0_i32, %c0_i32_0 : i32, i32
  }
  func.func @transform_4(%arg0: i32) -> (i32, i32) {
    %c0_i32 = arith.constant 0 : i32
    %c0_i32_0 = arith.constant 0 : i32
    %c0_i32_1 = arith.constant 0 : i32
    return %c0_i32, %c0_i32_0 : i32, i32
  }
  func.func @transform_5(%arg0: i32) -> (i32, i32) {
    %c0_i32 = arith.constant 0 : i32
    %c0_i32_0 = arith.constant 0 : i32
    return %arg0, %c0_i32 : i32, i32
  }
}

</mosaic_0001>

<bundles_post_ra>
// kernel: tpu_custom_call.1
= control target key start
LH: loop header
LB: loop body
LE: loop exit
PB: predicated region body
PF: predicated region fallthrough
CT: control target
= control target key end

     0   :  { %10 = vsyncpa [#allocation3], 0  ;;  %s408_s0 = inlined_call_operand.hbm [shape: f32[16,32], index: 0, kind: input, shape index: {}]   ;;  %s409_s1 = inlined_call_operand.hbm [shape: f32[32,32], index: 1, kind: input, shape index: {}]   ;;  %s410_s2 = inlined_call_operand.vmem [shape: f32[1,32], index: 2, kind: input, shape index: {}]   ;;  %s411_s3 = inlined_call_operand.vmem [shape: f32[1,32], index: 3, kind: input, shape index: {}]   ;;  %s412_s4 = inlined_call_operand.vmem [shape: f32[1,32], index: 4, kind: input, shape index: {}]   ;;  %s413_s5 = inlined_call_operand.hbm [shape: f32[16,32], index: 5, kind: output, shape index: {}]  }
   0x1   :  { %11 = vsyncpa [#allocation6], 0 }
   0x2   :  { %12 = vsyncpa [#allocation4], 0  ;;  %s328_s18 = smov [#allocation2]  }
   0x3   :  { %s18_s19 = sshll.u32 %s328_s18, 4  ;;  %s19_s19 = int_to_ptr.vmem [resolvable:$true] %s18_s19 }
   0x4   :  { %s270_s20 = scalar_lea.vmem %s19_s19, 256  ;;  %p275_p1 = scmp.lt.s32.totalorder %s19_s19, %s19_s19 }
   0x5   :  { %p271_p0 = scmp.ne.s32.totalorder %s19_s19, %s270_s20  ;;  %p276_p2 = scmp.lt.s32.totalorder %s270_s20, %s270_s20 }
   0x7   :  { %p277_p3 = por %p276_p2, %p275_p1 }
   0x9   :  { %p278_p4 = pnand %p277_p3, %p271_p0 }
   0xb   :  { %281 = shalt.err (!%p278_p4)
}
   0xc   :  { %s329_s21 = smov 128   ;;  %s330_s22 = smov 8  }
   0xd   :  { %24 = dma.hbm_to_vmem [thread:$0]  %s408_s0, 256, %s19_s19, [#allocation3], %s329_s21, %s329_s21, %s330_s22  }
   0xe   :  { %s331_s25 = smov [#allocation5]  }
   0xf   :  { %s30_s26 = sshll.u32 %s331_s25, 4  ;;  %s31_s26 = int_to_ptr.vmem [resolvable:$true] %s30_s26 }
  0x10   :  { %s290_s27 = scalar_lea.vmem %s31_s26, 512  ;;  %p295_p6 = scmp.lt.s32.totalorder %s31_s26, %s31_s26 }
  0x11   :  { %p291_p5 = scmp.ne.s32.totalorder %s31_s26, %s290_s27  ;;  %p296_p7 = scmp.lt.s32.totalorder %s290_s27, %s290_s27 }
  0x13   :  { %p297_p8 = por %p296_p7, %p295_p6 }
  0x15   :  { %p298_p9 = pnand %p297_p8, %p291_p5 }
  0x17   :  { %301 = shalt.err (!%p298_p9)
}
  0x18   :  { %36 = dma.hbm_to_vmem [thread:$0]  %s409_s1, 512, %s31_s26, [#allocation6], %s329_s21, %s329_s21, %s330_s22  }
  0x19   :  { %322 = dma.done.wait [#allocation3], 256  }
  0x1a   :  { %323 = vsyncadd [#allocation3], 4294967040 }
  0x1b   :  { %324 = dma.done.wait [#allocation6], 512  }
  0x1c   :  { %325 = vsyncadd [#allocation6], 4294966784  ;;  %vm51_vm0 = vcmask 261120   ;;  %v375_v0 = vld [vmem:[#allocation2] sm:$0xff]  ;;  %v377_v1 = vld [vmem:[#allocation2 + $0x8] sm:$0xff] }
  0x1d   :  { %v52_v2 = vsel %vm51_vm0, %v375_v0, 0.0  ;;  %v55_v3 = vsel %vm51_vm0, %v377_v1, 0.0  ;;  %v116_v14 = vld [vmem:[#allocation5 + $0x18] sm:$0xff]  ;;  %v115_v15 = vld [vmem:[#allocation5 + $0x10] sm:$0xff]  ;;  %v114_v16 = vld [vmem:[#allocation5 + $0x8] sm:$0xff] }
  0x1e   :  { %53 = vadd.xlane.f32.xlu0 %v52_v2  ;;  %238 = vmatprep.subr.mxu0 %v116_v14  ;;  %v113_v17 = vld [vmem:[#allocation5] sm:$0xff]  ;;  %v227_v35 = vld [vmem:[%s411_s3] ss:$0 sm:$0xff]  ;;  %s332_s3 = smov [#allocation7]  }
  0x1f   :  { %239 = vmatpush3.msra.mxu0 %v116_v14  ;;  %v228_v37 = vld [vmem:[%s412_s4] ss:$0 sm:$0xff]  ;;  %s214_s9 = sshll.u32 %s332_s3, 4  ;;  %s215_s9 = int_to_ptr.vmem [resolvable:$true] %s214_s9 }
  0x20   :  { %240 = vmatprep.subr.mxu0 %v115_v15  ;;  %v229_v44 = vld [vmem:[%s410_s2] ss:$0 sm:$0xff]  ;;  %s302_s4 = scalar_lea.vmem %s215_s9, 256  ;;  %p307_p11 = scmp.lt.s32.totalorder %s215_s9, %s215_s9 }
  0x21   :  { %241 = vmatpush3.msra.mxu0 %v115_v15  ;;  %p303_p10 = scmp.ne.s32.totalorder %s215_s9, %s302_s4  ;;  %p308_p12 = scmp.lt.s32.totalorder %s302_s4, %s302_s4 }
  0x22   :  { %56 = vadd.xlane.f32.xlu0 %v55_v3  ;;  %242 = vmatprep.subr.mxu0 %v114_v16 }
  0x23   :  { %243 = vmatpush3.msra.mxu0 %v114_v16  ;;  %p309_p13 = por %p308_p12, %p307_p11 }
  0x24   :  { %244 = vmatprep.subr.mxu0 %v113_v17 }
  0x25   :  { %245 = vmatpush3.msra.mxu0 %v113_v17  ;;  %p310_p0 = pnand %p309_p13, %p303_p10 }
  0xa7   :  { %v54_v4 = vpop.xlane.xlu0 %53 }
  0xa8   :  { %v59_v5 = vmul.f32 0.03125, %v54_v4 }
  0xaa   :  { %v61_v6 = vsub.f32 %v375_v0, %v59_v5 }
  0xab   :  { %v57_v7 = vpop.xlane.xlu0 %56 }
  0xac   :  { %v60_v8 = vmul.f32 0.03125, %v57_v7  ;;  %v63_v9 = vmul.f32 %v61_v6, %v61_v6 }
  0xae   :  { %v62_v10 = vsub.f32 %v377_v1, %v60_v8  ;;  %v65_v11 = vsel %vm51_vm0, %v63_v9, 0.0 }
  0xaf   :  { %66 = vadd.xlane.f32.xlu1 %v65_v11 }
  0xb0   :  { %v64_v12 = vmul.f32 %v62_v10, %v62_v10 }
  0xb2   :  { %v68_v13 = vsel %vm51_vm0, %v64_v12, 0.0 }
  0xb3   :  { %69 = vadd.xlane.f32.xlu1 %v68_v13 }
 0x138   :  { %v67_v18 = vpop.xlane.xlu1 %66 }
 0x139   :  { %v71_v19 = vmul.f32 0.032258064, %v67_v18 }
 0x13b   :  { %254 = vrsqrt.f32 %v71_v19  ;;  %vm75_vm1 = vcmp.eq.f32.partialorder %v71_v19, inf  ;;  %v78_v24 = vand.u32 2147483648, %v71_v19  ;;  %vm77_vm2 = vcmp.eq.f32.partialorder %v71_v19, 0.0 }
 0x13c   :  { %v70_v20 = vpop.xlane.xlu1 %69 }
 0x13d   :  { %v72_v21 = vmul.f32 0.032258064, %v70_v20 }
 0x13f   :  { %256 = vrsqrt.f32 %v72_v21  ;;  %vm82_vm3 = vcmp.eq.f32.partialorder %v72_v21, inf  ;;  %v85_v30 = vand.u32 2147483648, %v72_v21  ;;  %vm84_vm4 = vcmp.eq.f32.partialorder %v72_v21, 0.0 }
 0x148   :  { %v255_v22 = vpop.eup %254 }
 0x149   :  { %v74_v23 = vmul.f32 %v255_v22, %v71_v19 }
 0x14b   :  { %v76_v25 = vsel %vm75_vm1, %v71_v19, %v74_v23 }
 0x14c   :  { %v257_v26 = vpop.eup %256  ;;  %v79_v27 = vsel %vm77_vm2, %v78_v24, %v76_v25 }
 0x14d   :  { %v81_v28 = vmul.f32 %v257_v26, %v72_v21  ;;  %v87_v29 = vadd.f32 1e-06, %v79_v27 }
 0x14f   :  { %v83_v31 = vsel %vm82_vm3, %v72_v21, %v81_v28  ;;  %258 = vrcp.f32 %v87_v29 }
 0x150   :  { %v86_v32 = vsel %vm84_vm4, %v85_v30, %v83_v31 }
 0x151   :  { %v88_v33 = vadd.f32 1e-06, %v86_v32 }
 0x153   :  { %260 = vrcp.f32 %v88_v33 }
 0x15c   :  { %v259_v34 = vpop.eup %258 }
 0x15d   :  { %v94_v36 = vmul.f32 %v259_v34, %v61_v6 }
 0x15f   :  { %v102_v38 = vmul.f32 %v227_v35, %v94_v36 }
 0x160   :  { %v261_v39 = vpop.eup %260 }
 0x161   :  { %v95_v40 = vmul.f32 %v261_v39, %v62_v10  ;;  %v111_v41 = vadd.f32 %v228_v37, %v102_v38 }
 0x163   :  { %v103_v42 = vmul.f32 %v227_v35, %v95_v40  ;;  %246 = vmatprep.mubr.msk.f32.mxu0 %vm51_vm0, %v111_v41 }
 0x165   :  { %v112_v43 = vadd.f32 %v228_v37, %v103_v42 }
 0x167   :  { %247 = vmatmul.mubr.msk.f32.vlgmr.msra.gmra.mxu0 %vm51_vm0, %v112_v43 }
 0x227   :  { %v248_v45 = vpop.f32.mrf.mxu0 }
 0x228   :  { %v202_v46 = vadd.f32 %v248_v45, %v229_v44 }
 0x229   :  { %v196_v47 = vpop.f32.mrf.mxu0 }
 0x22a   :  { %v206_v48 = vadd.f32 %v202_v46, %v377_v1  ;;  %v197_v49 = vadd.f32 %v229_v44, %v196_v47 }
 0x22c   :  { %208 = vst.msk [vmem:[#allocation7 + $0x8] sm:$0xff] %vm51_vm0, %v206_v48  ;;  %v205_v50 = vadd.f32 %v197_v49, %v375_v0 }
 0x22e   :  { %207 = vst.msk [vmem:[#allocation7] sm:$0xff] %vm51_vm0, %v205_v50 }
 0x22f   :  { %313 = shalt.err (!%p310_p0)
}
 0x230   :  { %220 = dma.vmem_to_hbm [thread:$0]  %s215_s9, 256, %s413_s5, [#allocation4], %s329_s21, %s329_s21, %s330_s22  }
 0x231   :  { %326 = dma.done.wait [#allocation4], 256  }
 0x232   :  { %327 = vsyncadd [#allocation4], 4294967040 }
 0x233   :  { %224 = vsyncpa [#allocation3], 1 }
 0x234   :  { %225 = vsyncpa [#allocation6], 1 }
 0x235   :  { %226 = vsyncpa [#allocation4], 1 }

</bundles_post_ra>
